<compile_context>
chip_gen: v6e
topology: v6e:2x2x1
jax: 0.10.0
libtpu: 0.0.40
codegen_flags: <defaults>
</compile_context>

<pallas_src>
import jax
import jax.numpy as jnp
from jax.experimental import pallas as pl
from jax.experimental.pallas import tpu as pltpu

BN_EPS = 1e-5
G = 8  # rows packed per super-row (G * input_dim = 128 lanes when D = 16)


def _mlp_kernel(x_ref, w1_ref, w2_ref, w3_ref, b1_ref, b2_ref, b3_ref, o_ref):
    # x tile: (tbr, G*D) f32, cast to bf16 under the DMA on the VPU.
    # Weights: bf16 block-diagonal tiles, VMEM resident across grid steps.
    # Biases: f32, tiled G-fold.  Output block: (tbr, G) f32.
    x = x_ref[...].astype(jnp.bfloat16)

    # Linear(D, 32) [+ folded BN] + ReLU   (Dropout = identity at inference).
    h = jnp.dot(x, w1_ref[...], preferred_element_type=jnp.float32) + b1_ref[...]
    h = jnp.maximum(h, 0.0)

    # Linear(32, 16) [+ folded BN] + ReLU.
    h = jnp.dot(h.astype(jnp.bfloat16), w2_ref[...],
                preferred_element_type=jnp.float32) + b2_ref[...]
    h = jnp.maximum(h, 0.0)

    # Linear(16, 1): block-diagonal (G*16, G) weight -> one output per packed row.
    o_ref[...] = jnp.dot(h.astype(jnp.bfloat16), w3_ref[...],
                         preferred_element_type=jnp.float32) + b3_ref[...]


def _fold_bn(params):
    """Fold inference-mode BatchNorm1d into the preceding Linear layers (f32)."""
    s1 = params["g1"] * jax.lax.rsqrt(params["var1"] + BN_EPS)       # (1, 32)
    s2 = params["g2"] * jax.lax.rsqrt(params["var2"] + BN_EPS)       # (1, 16)
    w1f = params["w1"] * s1
    b1f = (params["b1"] - params["mean1"]) * s1 + params["beta1"]
    w2f = params["w2"] * s2
    b2f = (params["b2"] - params["mean2"]) * s2 + params["beta2"]
    return w1f, b1f, w2f, b2f, params["w3"], params["b3"]


def _round_up(n, m):
    return ((n + m - 1) // m) * m


def bike_volume_nn_forward(x, params, *, tb=8192):
    """BikeVolumeNN(num_layers=2) inference forward via one Pallas kernel.

    x:      (B, input_dim) float32
    params: dict of weights/biases/BN parameters (see init_params).
    tb:     batch tile in original rows (converted to packed super-rows).
    """
    B, D = x.shape
    w1f, b1f, w2f, b2f, w3, b3 = _fold_bn(params)

    # 8-way block-diagonal folded weights (built once; off-diagonal is exact 0,
    # so bf16 casting does not perturb it).
    eye = jnp.eye(G, dtype=jnp.float32)
    w1_bd = jnp.kron(eye, w1f).astype(jnp.bfloat16)       # (G*D,  G*32)
    w2_bd = jnp.kron(eye, w2f).astype(jnp.bfloat16)       # (G*32, G*16)
    w3_bd = jnp.kron(eye, w3).astype(jnp.bfloat16)        # (G*16, G)
    b1_bd = jnp.tile(b1f, (1, G))                         # (1, G*32) f32
    b2_bd = jnp.tile(b2f, (1, G))                         # (1, G*16) f32
    b3_bd = jnp.tile(b3, (1, G))                          # (1, G)    f32

    # Pack rows: (B, D) -> (R, G*D).  Row-major contiguous => free view; a pad
    # is only needed when B is not a multiple of G (rare, tiny).
    Bp = _round_up(B, G)
    if Bp != B:
        x = jnp.pad(x, ((0, Bp - B), (0, 0)))
    R = Bp // G
    xp = x.reshape(R, G * D)

    # Packed-row tile: multiple of 8 sublanes, capped at ceil(R/2) so the grid
    # has >=2 steps whenever possible (v7x has 2 TensorCores sharing the
    # "parallel" batch axis).  The ragged tail is handled by the cdiv grid;
    # boundary-block garbage only reaches output rows beyond R (never stored).
    tbr = max(8, _round_up(min(max(tb // G, 8), pl.cdiv(R, 2)), 8))
    grid = (pl.cdiv(R, tbr),)

    const = lambda i: (0, 0)
    flops = 2 * B * (D * 32 + 32 * 16 + 16 * 1)
    bytes_accessed = (B * D * 4 + B * 4
                      + 2 * (w1_bd.size + w2_bd.size + w3_bd.size)
                      + 4 * (b1_bd.size + b2_bd.size + b3_bd.size))

    out_p = pl.pallas_call(
        _mlp_kernel,
        out_shape=jax.ShapeDtypeStruct((R, G), jnp.float32),
        grid=grid,
        in_specs=[
            pl.BlockSpec((tbr, G * D), lambda i: (i, 0)),   # x: streamed f32 tile
            pl.BlockSpec((G * D, G * 32), const),           # W1' (VMEM resident)
            pl.BlockSpec((G * 32, G * 16), const),          # W2' (VMEM resident)
            pl.BlockSpec((G * 16, G), const),               # W3  (VMEM resident)
            pl.BlockSpec((1, G * 32), const),               # b1' tiled
            pl.BlockSpec((1, G * 16), const),               # b2' tiled
            pl.BlockSpec((1, G), const),                    # b3  tiled
        ],
        out_specs=pl.BlockSpec((tbr, G), lambda i: (i, 0)),
        compiler_params=pltpu.CompilerParams(
            dimension_semantics=("parallel",),
            # > v5e's 16 MiB scoped default, < v7x's 64 MiB physical VMEM.
            vmem_limit_bytes=32 * 1024 * 1024,
        ),
        cost_estimate=pl.CostEstimate(
            flops=flops, transcendentals=0, bytes_accessed=bytes_accessed),
    )(xp, w1_bd, w2_bd, w3_bd, b1_bd, b2_bd, b3_bd)

    # (R, G) -> (Bp, 1) is another free contiguous view; drop padded tail rows.
    return out_p.reshape(Bp, 1)[:B]


def init_params(key, input_dim):
    """Deterministic synthetic parameters matching BikeVolumeNN(num_layers=2)."""
    ks = jax.random.split(key, 14)

    def linear(kw, kb, fan_in, fan_out):
        # Uniform(-1/sqrt(fan_in), 1/sqrt(fan_in)) like torch.nn.Linear default.
        bound = 1.0 / jnp.sqrt(jnp.float32(fan_in))
        w = jax.random.uniform(kw, (fan_in, fan_out), jnp.float32, -bound, bound)
        b = jax.random.uniform(kb, (1, fan_out), jnp.float32, -bound, bound)
        return w, b

    w1, b1 = linear(ks[0], ks[1], input_dim, 32)
    w2, b2 = linear(ks[2], ks[3], 32, 16)
    w3, b3 = linear(ks[4], ks[5], 16, 1)

    def bn(kg, kbe, km, kv, n):
        # Non-trivial running statistics / affine so BN folding is exercised.
        return (jax.random.uniform(kg, (1, n), jnp.float32, 0.5, 1.5),
                0.1 * jax.random.normal(kbe, (1, n), jnp.float32),
                0.1 * jax.random.normal(km, (1, n), jnp.float32),
                jax.random.uniform(kv, (1, n), jnp.float32, 0.5, 1.5))

    g1, beta1, mean1, var1 = bn(ks[6], ks[7], ks[8], ks[9], 32)
    g2, beta2, mean2, var2 = bn(ks[10], ks[11], ks[12], ks[13], 16)

    return {
        "w1": w1, "b1": b1, "g1": g1, "beta1": beta1, "mean1": mean1, "var1": var1,
        "w2": w2, "b2": b2, "g2": g2, "beta2": beta2, "mean2": mean2, "var2": var2,
        "w3": w3, "b3": b3,
    }


def _reference_forward_f32(x, p):
    """Pure-JAX f32 reference of the inference-mode forward pass (unfolded BN)."""
    h = x @ p["w1"] + p["b1"]
    h = (h - p["mean1"]) * jax.lax.rsqrt(p["var1"] + BN_EPS) * p["g1"] + p["beta1"]
    h = jnp.maximum(h, 0.0)
    h = h @ p["w2"] + p["b2"]
    h = (h - p["mean2"]) * jax.lax.rsqrt(p["var2"] + BN_EPS) * p["g2"] + p["beta2"]
    h = jnp.maximum(h, 0.0)
    return h @ p["w3"] + p["b3"]


def _reference_forward_bf16(x, p):
    """Replicates the kernel numerics (BN folded, bf16 MXU operands, f32 acc)."""
    w1f, b1f, w2f, b2f, w3, b3 = _fold_bn(p)
    h = jnp.dot(x.astype(jnp.bfloat16), w1f.astype(jnp.bfloat16),
                preferred_element_type=jnp.float32) + b1f
    h = jnp.maximum(h, 0.0)
    h = jnp.dot(h.astype(jnp.bfloat16), w2f.astype(jnp.bfloat16),
                preferred_element_type=jnp.float32) + b2f
    h = jnp.maximum(h, 0.0)
    return jnp.dot(h.astype(jnp.bfloat16), w3.astype(jnp.bfloat16),
                   preferred_element_type=jnp.float32) + b3


if __name__ == "__main__":
    key = jax.random.PRNGKey(0)
    k_x, k_p = jax.random.split(key)

    # batch=200 (a multiple of 8, so the packing reshape is a free view) is
    # deliberately not a multiple of the packed-row tile, exercising the cdiv
    # grid + boundary-block masking path; the tile cap gives a 2-step grid.
    batch, input_dim = 200, 16
    x = jax.random.normal(k_x, (batch, input_dim), jnp.float32)
    params = init_params(k_p, input_dim)

    out = bike_volume_nn_forward(x, params)
    out = jax.block_until_ready(out)
    assert out.shape == (batch, 1)

    # Tight check vs. a reference with matching numerics (folded BN, bf16 dots).
    ref_exact = _reference_forward_bf16(x, params)
    assert jnp.allclose(out, ref_exact, atol=1e-3, rtol=1e-3), \
        float(jnp.max(jnp.abs(out - ref_exact)))

    # Loose sanity check vs. the full-f32 unfolded-BN reference (bf16 operands
    # loosen the tolerance).
    ref_f32 = _reference_forward_f32(x, params)
    assert jnp.allclose(out, ref_f32, atol=1e-1, rtol=1e-1), \
        float(jnp.max(jnp.abs(out - ref_f32)))

    print("KERNEL_OK")
</pallas_src>

<mosaic_0001>
module attributes {stable_mosaic.version = 11 : i64} {
  func.func @_mlp_kernel(%arg0: i32, %arg1: memref<16x128xf32, #tpu.memory_space<vmem>>, %arg2: memref<128x256xbf16, #tpu.memory_space<vmem>>, %arg3: memref<256x128xbf16, #tpu.memory_space<vmem>>, %arg4: memref<128x8xbf16, #tpu.memory_space<vmem>>, %arg5: memref<1x256xf32, #tpu.memory_space<vmem>>, %arg6: memref<1x128xf32, #tpu.memory_space<vmem>>, %arg7: memref<1x8xf32, #tpu.memory_space<vmem>>, %arg8: memref<16x8xf32, #tpu.memory_space<vmem>>) attributes {dimension_semantics = [#tpu.dimension_semantics<parallel>], iteration_bounds = array<i64: 2>, scalar_prefetch = 0 : i64, scratch_operands = 0 : i64, tpu.core_type = #tpu.core_type<tc>, window_params = [{transform_indices = @transform_0, window_bounds = array<i64: 16, 128>}, {pipeline_mode = #tpu.pipeline_mode<synchronous>, transform_indices = @transform_1, window_bounds = array<i64: 128, 256>}, {pipeline_mode = #tpu.pipeline_mode<synchronous>, transform_indices = @transform_2, window_bounds = array<i64: 256, 128>}, {pipeline_mode = #tpu.pipeline_mode<synchronous>, transform_indices = @transform_3, window_bounds = array<i64: 128, 8>}, {pipeline_mode = #tpu.pipeline_mode<synchronous>, transform_indices = @transform_4, window_bounds = array<i64: 1, 256>}, {pipeline_mode = #tpu.pipeline_mode<synchronous>, transform_indices = @transform_5, window_bounds = array<i64: 1, 128>}, {pipeline_mode = #tpu.pipeline_mode<synchronous>, transform_indices = @transform_6, window_bounds = array<i64: 1, 8>}, {transform_indices = @transform_7, window_bounds = array<i64: 16, 8>}]} {
    %c0 = arith.constant 0 : index
    %c0_0 = arith.constant 0 : index
    %0 = vector.load %arg1[%c0, %c0_0] : memref<16x128xf32, #tpu.memory_space<vmem>>, vector<16x128xf32>
    %1 = arith.truncf %0 : vector<16x128xf32> to vector<16x128xbf16>
    %c0_1 = arith.constant 0 : index
    %c0_2 = arith.constant 0 : index
    %2 = vector.load %arg2[%c0_1, %c0_2] : memref<128x256xbf16, #tpu.memory_space<vmem>>, vector<128x256xbf16>
    %cst = arith.constant dense<0.000000e+00> : vector<16x256xf32>
    %3 = tpu.matmul %1, %2, %cst {dimension_numbers = #tpu.dot_dimension_numbers<[1], [0], [0], [1], [0, 0, 1, 1], [], []>} : vector<16x128xbf16>, vector<128x256xbf16>, vector<16x256xf32> -> vector<16x256xf32>
    %c0_3 = arith.constant 0 : index
    %c0_4 = arith.constant 0 : index
    %4 = vector.load %arg5[%c0_3, %c0_4] : memref<1x256xf32, #tpu.memory_space<vmem>>, vector<1x256xf32>
    %5 = vector.broadcast %4 : vector<1x256xf32> to vector<16x256xf32>
    %6 = arith.addf %3, %5 : vector<16x256xf32>
    %cst_5 = arith.constant 0.000000e+00 : f32
    %7 = vector.broadcast %cst_5 : f32 to vector<16x256xf32>
    %8 = arith.maximumf %6, %7 : vector<16x256xf32>
    %9 = arith.truncf %8 : vector<16x256xf32> to vector<16x256xbf16>
    %c0_6 = arith.constant 0 : index
    %c0_7 = arith.constant 0 : index
    %10 = vector.load %arg3[%c0_6, %c0_7] : memref<256x128xbf16, #tpu.memory_space<vmem>>, vector<256x128xbf16>
    %cst_8 = arith.constant dense<0.000000e+00> : vector<16x128xf32>
    %11 = tpu.matmul %9, %10, %cst_8 {dimension_numbers = #tpu.dot_dimension_numbers<[1], [0], [0], [1], [0, 0, 1, 1], [], []>} : vector<16x256xbf16>, vector<256x128xbf16>, vector<16x128xf32> -> vector<16x128xf32>
    %c0_9 = arith.constant 0 : index
    %c0_10 = arith.constant 0 : index
    %12 = vector.load %arg6[%c0_9, %c0_10] : memref<1x128xf32, #tpu.memory_space<vmem>>, vector<1x128xf32>
    %13 = vector.broadcast %12 : vector<1x128xf32> to vector<16x128xf32>
    %14 = arith.addf %11, %13 : vector<16x128xf32>
    %cst_11 = arith.constant 0.000000e+00 : f32
    %15 = vector.broadcast %cst_11 : f32 to vector<16x128xf32>
    %16 = arith.maximumf %14, %15 : vector<16x128xf32>
    %17 = arith.truncf %16 : vector<16x128xf32> to vector<16x128xbf16>
    %c0_12 = arith.constant 0 : index
    %c0_13 = arith.constant 0 : index
    %18 = vector.load %arg4[%c0_12, %c0_13] : memref<128x8xbf16, #tpu.memory_space<vmem>>, vector<128x8xbf16>
    %cst_14 = arith.constant dense<0.000000e+00> : vector<16x8xf32>
    %19 = tpu.matmul %17, %18, %cst_14 {dimension_numbers = #tpu.dot_dimension_numbers<[1], [0], [0], [1], [0, 0, 1, 1], [], []>} : vector<16x128xbf16>, vector<128x8xbf16>, vector<16x8xf32> -> vector<16x8xf32>
    %c0_15 = arith.constant 0 : index
    %c0_16 = arith.constant 0 : index
    %20 = vector.load %arg7[%c0_15, %c0_16] : memref<1x8xf32, #tpu.memory_space<vmem>>, vector<1x8xf32>
    %21 = vector.broadcast %20 : vector<1x8xf32> to vector<16x8xf32>
    %22 = arith.addf %19, %21 : vector<16x8xf32>
    %c0_17 = arith.constant 0 : index
    %c0_18 = arith.constant 0 : index
    %23 = vector.load %arg8[%c0_17, %c0_18] : memref<16x8xf32, #tpu.memory_space<vmem>>, vector<16x8xf32>
    tpu.vector_store %arg8[%c0_17, %c0_18], %22 {strides = array<i32>} : memref<16x8xf32, #tpu.memory_space<vmem>>, vector<16x8xf32>,
    return
  }
  func.func @transform_0(%arg0: i32) -> (i32, i32) {
    %c0_i32 = arith.constant 0 : i32
    %c0_i32_0 = arith.constant 0 : i32
    return %arg0, %c0_i32 : i32, i32
  }
  func.func @transform_1(%arg0: i32) -> (i32, i32) {
    %c0_i32 = arith.constant 0 : i32
    %c0_i32_0 = arith.constant 0 : i32
    %c0_i32_1 = arith.constant 0 : i32
    return %c0_i32, %c0_i32_0 : i32, i32
  }
  func.func @transform_2(%arg0: i32) -> (i32, i32) {
    %c0_i32 = arith.constant 0 : i32
    %c0_i32_0 = arith.constant 0 : i32
    %c0_i32_1 = arith.constant 0 : i32
    return %c0_i32, %c0_i32_0 : i32, i32
  }
  func.func @transform_3(%arg0: i32) -> (i32, i32) {
    %c0_i32 = arith.constant 0 : i32
    %c0_i32_0 = arith.constant 0 : i32
    %c0_i32_1 = arith.constant 0 : i32
    return %c0_i32, %c0_i32_0 : i32, i32
  }
  func.func @transform_4(%arg0: i32) -> (i32, i32) {
    %c0_i32 = arith.constant 0 : i32
    %c0_i32_0 = arith.constant 0 : i32
    %c0_i32_1 = arith.constant 0 : i32
    return %c0_i32, %c0_i32_0 : i32, i32
  }
  func.func @transform_5(%arg0: i32) -> (i32, i32) {
    %c0_i32 = arith.constant 0 : i32
    %c0_i32_0 = arith.constant 0 : i32
    %c0_i32_1 = arith.constant 0 : i32
    return %c0_i32, %c0_i32_0 : i32, i32
  }
  func.func @transform_6(%arg0: i32) -> (i32, i32) {
    %c0_i32 = arith.constant 0 : i32
    %c0_i32_0 = arith.constant 0 : i32
    %c0_i32_1 = arith.constant 0 : i32
    return %c0_i32, %c0_i32_0 : i32, i32
  }
  func.func @transform_7(%arg0: i32) -> (i32, i32) {
    %c0_i32 = arith.constant 0 : i32
    %c0_i32_0 = arith.constant 0 : i32
    return %arg0, %c0_i32 : i32, i32
  }
}

</mosaic_0001>

<bundles_post_ra>
// kernel: tpu_custom_call.1
= control target key start
LH: loop header
LB: loop body
LE: loop exit
PB: predicated region body
PF: predicated region fallthrough
CT: control target
= control target key end

     0   :  { %12 = vsyncpa [#allocation3], 0  ;;  %s1259_s0 = inlined_call_operand.vmem [shape: f32[25,128], index: 0, kind: input, shape index: {}]   ;;  %s1260_s1 = inlined_call_operand.hbm [shape: bf16[128,256], index: 1, kind: input, shape index: {}]   ;;  %s1261_s2 = inlined_call_operand.hbm [shape: bf16[256,128], index: 2, kind: input, shape index: {}]   ;;  %s1262_s3 = inlined_call_operand.vmem [shape: bf16[128,8], index: 3, kind: input, shape index: {}]   ;;  %s1263_s4 = inlined_call_operand.vmem [shape: f32[1,256], index: 4, kind: input, shape index: {}]   ;;  %s1264_s5 = inlined_call_operand.vmem [shape: f32[1,128], index: 5, kind: input, shape index: {}]   ;;  %s1265_s6 = inlined_call_operand.vmem [shape: f32[1,8], index: 6, kind: input, shape index: {}]   ;;  %s1266_s7 = inlined_call_operand.vmem [shape: f32[25,8], index: 7, kind: output, shape index: {}]  }
   0x1   :  { %13 = vsyncpa [#allocation5], 0  ;;  %s1154_s24 = smov 0  }
   0x2 LB: > { %s1105_s25 = smov [#allocation2]   ;;  %s845_s27 = sadd.s32 4294967295, %s1103_s24   ;;  %s1103_s24 = sphi %s1154_s24, %s19_s24  }
   0x3   : > { %s214_s26 = sshll.u32 %s1105_s25, 4  ;;  %p847_p0 = scmp.ge.s32.totalorder %s1103_s24, 1  ;;  %s215_s26 = int_to_ptr.vmem [resolvable:$true] %s214_s26 }
   0x4   : > { %p202_p1 = scmp.lt.s32.totalorder %s1103_s24, 3  ;;  %p1168_p3 = scmp.eq.s32.totalorder %s845_s27, 0 }
   0x5   : > { %s1106_s30 = smov [#allocation4]   ;;  %s1048_s10 = scalar_lea.vmem %s215_s26, 2048 }
   0x6   : > { %p1162_p2 = pnand %p847_p0, %p202_p1  ;;  %s227_s8 = sshll.u32 %s1106_s30, 4  ;;  %s228_s8 = int_to_ptr.vmem [resolvable:$true] %s227_s8 }
   0x7   : > { %p1049_p7 = scmp.ne.s32.totalorder %s215_s26, %s1048_s10  ;;  %p1056_p10 = scmp.lt.s32.totalorder %s215_s26, %s215_s26 }
   0x8   : > { %p961_p4 = pneg %p1162_p2  ;;  %p1057_p11 = scmp.lt.s32.totalorder %s1048_s10, %s1048_s10 }
   0xa   : > { %p1176_p5 = pnand %p1168_p3, %p961_p4  ;;  %p1058_p12 = por %p1057_p11, %p1056_p10 }
   0xc   : > { %p1039_p6 = pneg %p1176_p5 }
   0xe   : > { %p1051_p8 = pnand %p1049_p7, %p1039_p6 }
  0x10   : > { %p1052_p9 = pneg %p1051_p8 }
  0x12   : > { %p1059_p13 = pnand %p1058_p12, %p1052_p9 }
  0x14   : > { %1062 = shalt.err (!%p1059_p13)
}
  0x15   : > { %s1107_s11 = smov 128   ;;  %s1108_s12 = smov 8  }
  0x16   : > { %964 = dma.hbm_to_vmem [thread:$0]  (!%p1176_p5), %s1260_s1, 2048, %s215_s26, [#allocation3], %s1107_s11, %s1107_s11, %s1108_s12  }
  0x17   : > { %s1074_s15 = scalar_lea.vmem %s228_s8, 2048  ;;  %p1082_p7 = scmp.lt.s32.totalorder %s228_s8, %s228_s8 }
  0x18   : > { %p1075_p0 = scmp.ne.s32.totalorder %s228_s8, %s1074_s15  ;;  %p1083_p8 = scmp.lt.s32.totalorder %s1074_s15, %s1074_s15 }
  0x1a   : > { %p1077_p1 = pnand %p1075_p0, %p1039_p6  ;;  %p1084_p10 = por %p1083_p8, %p1082_p7 }
  0x1c   : > { %p1078_p4 = pneg %p1077_p1 }
  0x1e   : > { %p1085_p9 = pnand %p1084_p10, %p1078_p4 }
  0x20   : > { %1088 = shalt.err (!%p1085_p9)
}
  0x21   : > { %s1109_s16 = smov 64   ;;  %s1110_s17 = smov 4  }
  0x22   : > { %967 = dma.hbm_to_vmem [thread:$0]  (!%p1176_p5), %s1261_s2, 2048, %s228_s8, [#allocation5], %s1109_s16, %s1109_s16, %s1110_s17  }
  0x23   : > { %264 = sbr.rel (%p1162_p2) target bundleno = 689 (0x2b1), region = 48 }
  0x28   : > { %1094 = dma.done.wait (%p1168_p3), [#allocation3], 2048  }
  0x29   : > { %1096 = vsyncadd (%p1168_p3), [#allocation3], 4294965248 }
  0x2a   : > { %1098 = dma.done.wait (%p1168_p3), [#allocation5], 2048  }
  0x2b   : > { %1100 = vsyncadd (%p1168_p3), [#allocation5], 4294965248  ;;  %v1111_v0 = vmov 0   ;;  %v989_v1 = vld [vmem:[#allocation2 + $0x74] ss:$8 sps:$4 sm:$0xff]   ;;  %s854_s20 = sshll.u32 %s845_s27, 1  ;;  %v334_v41 = vlaneseq }
  0x2c   : > { %456 = vmatprep.mubr.bf16.mxu0 %v1111_v0  ;;  %v991_v2 = vld [vmem:[#allocation2 + $0x70] ss:$8 sps:$4 sm:$0xff]   ;;  %424 = vmatprep.subr.bf16.mxu0 %v989_v1  ;;  %v992_v3 = vld [vmem:[#allocation2 + $0x64] ss:$8 sps:$4 sm:$0xff]   ;;  %v994_v4 = vld [vmem:[#allocation2 + $0x60] ss:$8 sps:$4 sm:$0xff]  }
  0x2d   : > { %425 = vmatpush1.bf16.msra.mxu0 %v991_v2  ;;  %v995_v5 = vld [vmem:[#allocation2 + $0x54] ss:$8 sps:$4 sm:$0xff]   ;;  %v997_v6 = vld [vmem:[#allocation2 + $0x50] ss:$8 sps:$4 sm:$0xff]   ;;  %v998_v7 = vld [vmem:[#allocation2 + $0x44] ss:$8 sps:$4 sm:$0xff]  }
  0x2e   : > { %426 = vmatprep.subr.bf16.mxu0 %v992_v3  ;;  %v1000_v8 = vld [vmem:[#allocation2 + $0x40] ss:$8 sps:$4 sm:$0xff]   ;;  %p301_p2 = scmp.lt.s32.totalorder %s854_s20, 3  ;;  %v1001_v9 = vld [vmem:[#allocation2 + $0x34] ss:$8 sps:$4 sm:$0xff]   ;;  %v1112_v37 = vmov 0.0  }
  0x2f   : > { %v1013_v10 = vld [vmem:[#allocation4 + $0x78] sm:$0xff]   ;;  %v1004_v13 = vld [vmem:[#allocation2 + $0x24] ss:$8 sps:$4 sm:$0xff]   ;;  %v1015_v14 = vld [vmem:[#allocation4 + $0x70] sm:$0xff]   ;;  %v335_v42 = vshrl.u32 %v334_v41, 7  ;;  %vm1113_vm0 = vmmov 0  }
  0x30   : > { %v1003_v11 = vld [vmem:[#allocation2 + $0x30] ss:$8 sps:$4 sm:$0xff]   ;;  %902 = vmatprep.subr.bf16.mxu1 %v1013_v10  ;;  %s1271_s20 = smov (!%p301_p2, %s854_s20), 3  ;;  %v1017_v16 = vld [vmem:[#allocation4 + $0x68] sm:$0xff]   ;;  %v1007_v18 = vld [vmem:[#allocation2 + $0x14] ss:$8 sps:$4 sm:$0xff]  }
  0x31   : > { %427 = vmatpush1.bf16.msra.mxu0 %v994_v4  ;;  %v1014_v12 = vld [vmem:[#allocation4 + $0x38] sm:$0xff]   ;;  %v1016_v15 = vld [vmem:[#allocation4 + $0x30] sm:$0xff]   ;;  %v1006_v17 = vld [vmem:[#allocation2 + $0x20] ss:$8 sps:$4 sm:$0xff]   ;;  %s855_s21 = sshll.u32 %s1271_s20, 3  ;;  %v340_v43 = vsub.s32 1, %v335_v42 }
  0x32   : > { %428 = vmatprep.subr.bf16.mxu0 %v995_v5  ;;  %903 = vmatpush3.bf16.msra.mxu1 %v1014_v12  ;;  %v1018_v19 = vld [vmem:[#allocation4 + $0x28] sm:$0xff]   ;;  %v1019_v20 = vld [vmem:[#allocation4 + $0x60] sm:$0xff]   ;;  %v1009_v21 = vld [vmem:[#allocation2 + $0x10] ss:$8 sps:$4 sm:$0xff]   ;;  %s304_s25 = scalar_lea.vmem %s1259_s0, %s855_s21  ;;  %v336_v44 = vsub.s32 0, %v335_v42  ;;  %s310_s30 = scalar_lea.vmem %s1266_s7, %s855_s21  ;;  %vm764_vm1 = vcmask 64512  }
  0x33   : > { %904 = vmatprep.subr.bf16.mxu1 %v1015_v14  ;;  %v1020_v22 = vld [vmem:[#allocation4 + $0x20] sm:$0xff]   ;;  %v1021_v24 = vld [vmem:[#allocation4 + $0x58] sm:$0xff]   ;;  %v314_v27 = vld [vmem:[%s304_s25 + $0x8] sm:$0xff] }
  0x34   : > { %v1010_v23 = vld [vmem:[#allocation2 + $0x4] ss:$8 sps:$4 sm:$0xff]   ;;  %v1012_v25 = vld [vmem:[#allocation2] ss:$8 sps:$4 sm:$0xff]   ;;  %v1022_v28 = vld [vmem:[#allocation4 + $0x18] sm:$0xff]  }
  0x35   : > { %429 = vmatpush1.bf16.msra.mxu0 %v997_v6  ;;  %v313_v26 = vld [vmem:[%s304_s25] sm:$0xff]  ;;  %v1023_v30 = vld [vmem:[#allocation4 + $0x50] sm:$0xff]   ;;  %v1025_v32 = vld [vmem:[#allocation4 + $0x48] sm:$0xff]  }
  0x36   : > { %430 = vmatprep.subr.bf16.mxu0 %v998_v7  ;;  %905 = vmatpush3.bf16.msra.mxu1 %v1016_v15  ;;  %v315_v29 = vpack.c.bf16 %v314_v27, %v313_v26  ;;  %v1024_v31 = vld [vmem:[#allocation4 + $0x10] sm:$0xff]   ;;  %v1026_v33 = vld [vmem:[#allocation4 + $0x8] sm:$0xff]   ;;  %v1027_v34 = vld [vmem:[#allocation4 + $0x40] sm:$0xff]  }
  0x37   : > { %906 = vmatprep.subr.bf16.mxu1 %v1017_v16  ;;  %v1028_v35 = vld [vmem:[#allocation4] sm:$0xff]   ;;  %v1029_v36 = vld [vmem:[%s1262_s3 + $0x38] sm:$0xff]   ;;  %v1030_v38 = vld [vmem:[%s1262_s3 + $0x30] sm:$0xff]  }
  0x38   : > { %v1031_v39 = vld [vmem:[%s1262_s3 + $0x28] sm:$0xff]   ;;  %v1032_v40 = vld [vmem:[%s1262_s3 + $0x20] sm:$0xff]   ;;  %v1033_v62 = vld [vmem:[%s1262_s3 + $0x18] sm:$0xff]  }
  0x39   : > { %431 = vmatpush1.bf16.msra.mxu0 %v1000_v8  ;;  %v332_v45 = vld [vmem:[%s1263_s4] sm:$0x3]  ;;  %v1034_v63 = vld [vmem:[%s1262_s3 + $0x10] sm:$0xff]   ;;  %v1035_v0 = vld [vmem:[%s1262_s3 + $0x8] sm:$0xff]  }
  0x3a   : > { %432 = vmatprep.subr.bf16.mxu0 %v1001_v9  ;;  %907 = vmatpush3.bf16.msra.mxu1 %v1018_v19  ;;  %v341_v47 = vrot.slane %v332_v45, %v340_v43  ;;  %v337_v48 = vrot.slane %v332_v45, %v336_v44  ;;  %v1036_v1 = vld [vmem:[%s1262_s3] sm:$0xff]  }
  0x3b   : > { %908 = vmatprep.subr.bf16.mxu1 %v1019_v20  ;;  %v874_v5 = vld [vmem:[%s1264_s5] ss:$0 sm:$0xff] }
  0x3c   : > { %v891_v14 = vld [vmem:[%s1265_s6] ss:$0 sm:$0xff] }
  0x3d   : > { %433 = vmatpush1.bf16.msra.mxu0 %v1003_v11 }
  0x3e   : > { %434 = vmatprep.subr.bf16.mxu0 %v1004_v13  ;;  %909 = vmatpush3.bf16.msra.mxu1 %v1020_v22 }
  0x3f   : > { %910 = vmatprep.subr.bf16.mxu1 %v1021_v24 }
  0x41   : > { %435 = vmatpush1.bf16.msra.mxu0 %v1006_v17 }
  0x42   : > { %436 = vmatprep.subr.bf16.mxu0 %v1007_v18  ;;  %911 = vmatpush3.bf16.msra.mxu1 %v1022_v28 }
  0x43   : > { %912 = vmatprep.subr.bf16.mxu1 %v1023_v30 }
  0x45   : > { %437 = vmatpush1.bf16.msra.mxu0 %v1009_v21 }
  0x46   : > { %438 = vmatprep.subr.bf16.mxu0 %v1010_v23  ;;  %913 = vmatpush3.bf16.msra.mxu1 %v1024_v31 }
  0x47   : > { %914 = vmatprep.subr.bf16.mxu1 %v1025_v32 }
  0x49   : > { %439 = vmatpush1.bf16.msra.mxu0 %v1012_v25 }
  0x4a   : > { %915 = vmatpush3.bf16.msra.mxu1 %v1026_v33  ;;  %933 = vmatprep.subr.bf16.mxu0 %v1112_v37 }
  0x4b   : > { %916 = vmatprep.subr.bf16.mxu1 %v1027_v34 }
  0x4c   : > { %457 = vmatmul.mubr.bf16.vlgmr.msra.gmra.mxu0 %v315_v29 }
  0x4d   : > { %934 = vmatpush3.bf16.msra.mxu0 %v1029_v36  ;;  %949 = vmatprep.mubr.msk.bf16.mxu0 %vm1113_vm0, %v1112_v37 }
  0x4e   : > { %917 = vmatpush3.bf16.msra.mxu1 %v1028_v35  ;;  %935 = vmatprep.subr.bf16.mxu0 %v1112_v37 }
  0x51   : > { %936 = vmatpush3.bf16.msra.mxu0 %v1030_v38 }
  0x52   : > { %937 = vmatprep.subr.bf16.mxu0 %v1112_v37 }
  0x55   : > { %938 = vmatpush3.bf16.msra.mxu0 %v1031_v39 }
  0x56   : > { %939 = vmatprep.subr.bf16.mxu0 %v1112_v37 }
  0x59   : > { %940 = vmatpush3.bf16.msra.mxu0 %v1032_v40 }
  0x5a   : > { %941 = vmatprep.subr.bf16.mxu0 %v1112_v37 }
  0x5d   : > { %942 = vmatpush3.bf16.msra.mxu0 %v1033_v62 }
  0x5e   : > { %943 = vmatprep.subr.bf16.mxu0 %v1112_v37 }
  0x61   : > { %944 = vmatpush3.bf16.msra.mxu0 %v1034_v63 }
  0x62   : > { %945 = vmatprep.subr.bf16.mxu0 %v1112_v37 }
  0x65   : > { %946 = vmatpush3.bf16.msra.mxu0 %v1035_v0 }
  0x66   : > { %947 = vmatprep.subr.bf16.mxu0 %v1112_v37 }
  0x69   : > { %948 = vmatpush3.bf16.msra.mxu0 %v1036_v1 }
 0x10c   : > { %v458_v46 = vpop.f32.mrf.mxu0 }
 0x10d   : > { %v459_v53 = vadd.f32 %v458_v46, %v337_v48 }
 0x10e   : > { %v460_v49 = vpop.f32.mrf.mxu0 }
 0x10f   : > { %v461_v51 = vadd.f32 %v460_v49, %v341_v47  ;;  %v467_v59 = vmax.f32 %v459_v53, 0.0 }
 0x110   : > { %v462_v50 = vpop.f32.mrf.mxu0 }
 0x111   : > { %v463_v52 = vadd.f32 %v462_v50, %v337_v48  ;;  %v468_v57 = vmax.f32 %v461_v51, 0.0 }
 0x112   : > { %v464_v54 = vpop.f32.mrf.mxu0 }
 0x113   : > { %v465_v55 = vadd.f32 %v464_v54, %v341_v47  ;;  %v469_v56 = vmax.f32 %v463_v52, 0.0 }
 0x115   : > { %v470_v58 = vmax.f32 %v465_v55, 0.0  ;;  %v471_v61 = vpack.c.bf16 %v469_v56, %v467_v59 }
 0x117   : > { %v472_v60 = vpack.c.bf16 %v470_v58, %v468_v57 }
 0x119   : > { %640 = vmatprep.mubr.bf16.mxu1 %v472_v60 }
 0x11a   : > { %641 = vmatmul.mubr.bf16.vlgmr.msra.gmra.mxu1 %v471_v61 }
 0x1da   : > { %v918_v2 = vpop.f32.mrf.mxu1 }
 0x1dc   : > { %v919_v3 = vpop.f32.mrf.mxu1 }
 0x1dd   : > { %v920_v4 = vadd.f32 %v919_v3, %v918_v2 }
 0x1de   : > { %v921_v6 = vpop.f32.mrf.mxu1 }
 0x1df   : > { %v643_v8 = vadd.f32 %v920_v4, %v874_v5 }
 0x1e0   : > { %v922_v7 = vpop.f32.mrf.mxu1 }
 0x1e1   : > { %v923_v9 = vadd.f32 %v922_v7, %v921_v6  ;;  %v649_v11 = vmax.f32 %v643_v8, 0.0 }
 0x1e3   : > { %v646_v10 = vadd.f32 %v923_v9, %v874_v5 }
 0x1e5   : > { %v650_v12 = vmax.f32 %v646_v10, 0.0 }
 0x1e7   : > { %v651_v13 = vpack.c.bf16 %v650_v12, %v649_v11 }
 0x1e9   : > { %950 = vmatmul.mubr.bf16.vlgmr.msra.gmra.mxu0 %v651_v13 }
 0x2a9   : > { %v757_v15 = vpop.f32.mrf.mxu0 }
 0x2aa   : > { %v758_v16 = vadd.f32 %v891_v14, %v757_v15 }
 0x2ab   : > { %v951_v17 = vpop.f32.mrf.mxu0 }
 0x2ac   : > { %765 = vst.msk [vmem:[%s310_s30] sm:$0xff] %vm764_vm1, %v758_v16 }
 0x2ad   : > { %v760_v18 = vpop.f32.mrf.mxu0 }
 0x2ae   : > { %v761_v19 = vadd.f32 %v891_v14, %v760_v18 }
 0x2af   : > { %v952_v20 = vpop.f32.mrf.mxu0 }
 0x2b0   : > { %766 = vst.msk [vmem:[%s310_s30 + $0x8] sm:$0xff] %vm764_vm1, %v761_v19 }
 0x2b1 PF: > { %s19_s24 = sadd.s32 1, %s1103_s24  }
 0x2b2   : > { %p16_p3 = scmp.ge.s32.totalorder %s19_s24, 4  }
 0x2b4   :  { %18 = sbr.rel (!%p16_p3) target bundleno = 2 (0x2), region = 87 }
 0x2b9   :  { %789 = vsyncpa [#allocation3], 1 }
 0x2ba   :  { %791 = vsyncpa [#allocation3 + $0x1], 1 }
 0x2bb   :  { %792 = vsyncpa [#allocation5], 1 }

</bundles_post_ra>
